<compile_context>
chip_gen: v6e
topology: v6e:2x2x1
jax: 0.10.0
libtpu: 0.0.40
codegen_flags: <defaults>
</compile_context>

<pallas_src>
import functools

import jax
import jax.numpy as jnp
from jax.experimental import pallas as pl
from jax.experimental.pallas import tpu as pltpu


def _round_up(value, multiple):
    return ((value + multiple - 1) // multiple) * multiple


# --------------------------------------------------------------------------------------
# Kernel 1: basis projection  XB[b] = x @ bases[b]  (all bases per grid step)
# --------------------------------------------------------------------------------------
def _basis_projection_kernel(x_ref, bases_ref, xb_ref, acc_ref, *, num_bases):
    k = pl.program_id(1)

    @pl.when(k == 0)
    def _():
        acc_ref[...] = jnp.zeros_like(acc_ref)

    x_tile = x_ref[...]
    for b in range(num_bases):
        acc_ref[b] += jnp.dot(x_tile, bases_ref[b],
                              preferred_element_type=jnp.float32)

    @pl.when(k == pl.num_programs(1) - 1)
    def _():
        xb_ref[...] = acc_ref[...].astype(xb_ref.dtype)


# --------------------------------------------------------------------------------------
# Kernel 2: per-relation aggregation with sparsity-aware block skipping
#   acc[t_tile] += adj[r, t_tile, s_tile] @ (sum_b att[r, b] * XB[b, s_tile])
# --------------------------------------------------------------------------------------
def _relation_aggregation_kernel(mask_ref, fetch_ref, att_ref, adj_ref, xb_ref,
                                 out_ref, acc_ref, *,
                                 num_bases, num_relations, n_src_tiles):
    t = pl.program_id(0)
    s = pl.program_id(1)
    r = pl.program_id(2)

    @pl.when(jnp.logical_and(s == 0, r == 0))
    def _():
        acc_ref[...] = jnp.zeros_like(acc_ref)

    g = (t * n_src_tiles + s) * num_relations + r

    # Skip the whole block (VPU combine + MXU matmul) when this (r, t, s) tile has no
    # edges; the adj DMA is also skipped via the index_map (it re-returns the previous
    # block index for empty tiles).
    @pl.when(mask_ref[g] > 0)
    def _():
        base = r * num_bases
        # att-weighted basis combine in the XB storage dtype (bf16 -> full-width VPU on
        # v6e/v7x; f32 when mxu_dtype=f32). No extra cast pass before the MXU.
        xw = att_ref[base].astype(xb_ref.dtype) * xb_ref[0]
        for b in range(1, num_bases):
            xw = xw + att_ref[base + b].astype(xb_ref.dtype) * xb_ref[b]
        acc_ref[...] += jnp.dot(adj_ref[0], xw,
                                preferred_element_type=jnp.float32)

    @pl.when(jnp.logical_and(s == pl.num_programs(1) - 1,
                             r == pl.num_programs(2) - 1))
    def _():
        out_ref[...] = acc_ref[...].astype(out_ref.dtype)


# --------------------------------------------------------------------------------------
# Wrapper
# --------------------------------------------------------------------------------------
def bases_decomposition_forward(x, source, target, edge_type, att, bases,
                                edge_weights=None, accumulator=None,
                                *, mxu_dtype=jnp.bfloat16):
    """Relation-specific message passing (Decomposition.forward).

    x:            (num_nodes, input_dim) float
    source:       (num_edges,) int
    target:       (num_edges,) int
    edge_type:    (num_edges,) int
    edge_weights: optional (num_edges,) float
    accumulator:  optional (num_nodes, output_dim) float
    returns:      (num_nodes, output_dim) float
    """
    num_nodes, input_dim = x.shape
    num_relations, num_bases = att.shape
    output_dim = bases.shape[-1]
    f32 = jnp.float32
    bytes_mxu = jnp.dtype(mxu_dtype).itemsize

    # ---- VMEM budget (generation-aware; conservative fallback = v7x's 64 MiB/TC) ----
    try:
        vmem_cap = int(pltpu.get_tpu_info().vmem_capacity_bytes)
    except Exception:
        vmem_cap = 64 * 1024 * 1024
    vmem_limit = min(int(vmem_cap * 0.7), 96 * 1024 * 1024)
    budget = int(vmem_limit * 0.8)

    # ---- tile / padding selection: lane-dense (multiples of 128), (8,128)-aligned ----
    d_out_p = _round_up(output_dim, 128)
    d_in_p = _round_up(input_dim, 128)
    if d_in_p <= 512:
        tk = d_in_p
    else:
        d_in_p = _round_up(d_in_p, 512)
        tk = 512

    rn = _round_up(num_nodes, 128)
    if rn <= 512:
        tnt = tns = n_p = rn        # small graphs: one tile covers all nodes
    else:
        # Prefer big target tiles (halves XB re-fetch + per-step overhead on v5e/v6e);
        # shrink the source tile first if the untiled (B, tns, Dout) XB block would blow
        # the VMEM budget (v7x guard).
        tnt = tns = 512

        def _k2_vmem(t_t, t_s):
            return (t_t * t_s * bytes_mxu * 2                         # adj (2 buffers)
                    + num_bases * t_s * d_out_p * bytes_mxu * 2       # XB (2 buffers)
                    + t_t * d_out_p * bytes_mxu * 2                   # out (2 buffers)
                    + t_t * d_out_p * 4)                              # f32 accumulator

        while tns > 256 and _k2_vmem(tnt, tns) > budget:
            tns //= 2
        while tnt > 256 and _k2_vmem(tnt, tns) > budget:
            tnt //= 2
        n_p = _round_up(num_nodes, max(tnt, tns))

    # Kernel-1 guard: bases/out/acc blocks carry all num_bases at once.
    while tk % 256 == 0 and (
        tns * tk * bytes_mxu * 2
        + num_bases * tk * d_out_p * bytes_mxu * 2
        + num_bases * tns * d_out_p * (bytes_mxu * 2 + 4)
    ) > budget:
        tk //= 2

    n_tgt_tiles = n_p // tnt
    n_src_tiles = n_p // tns
    n_k_tiles = d_in_p // tk

    # ---- glue: fold edge gather/scatter into a dense weighted adjacency, scattered
    #      directly in the MXU dtype (no f32 staging pass over R*N^2 bytes) ----
    ew = (jnp.ones((source.shape[0],), f32) if edge_weights is None
          else edge_weights.astype(f32)).astype(mxu_dtype)
    adj = jnp.zeros((num_relations, n_p, n_p), mxu_dtype)
    adj = adj.at[edge_type, target, source].add(ew)

    x_p = jnp.zeros((n_p, d_in_p), mxu_dtype)
    x_p = x_p.at[:num_nodes, :input_dim].set(x.astype(mxu_dtype))
    bases_p = jnp.zeros((num_bases, d_in_p, d_out_p), mxu_dtype)
    bases_p = bases_p.at[:, :input_dim, :output_dim].set(bases.astype(mxu_dtype))
    att_flat = att.reshape(-1).astype(f32)           # 1D for cheap SMEM layout

    # ---- sparsity tables (scalar-prefetched): per-(t, s, r) block occupancy, and the
    #      adj block index to DMA at each grid step (= last nonempty block within the
    #      current target tile, so empty steps reuse the resident buffer -> DMA skipped).
    t_tile = target // tnt
    s_tile = source // tns
    mask3 = jnp.zeros((n_tgt_tiles, n_src_tiles, num_relations), jnp.int32)
    mask3 = mask3.at[t_tile, s_tile, edge_type].set(1)
    mask_flat = mask3.reshape(-1)
    sr = n_src_tiles * num_relations
    g_idx = jnp.arange(n_tgt_tiles * sr, dtype=jnp.int32).reshape(n_tgt_tiles, sr)
    cand = jnp.where(mask3.reshape(n_tgt_tiles, sr) > 0, g_idx, jnp.int32(-1))
    fetch_flat = jnp.maximum(jax.lax.cummax(cand, axis=1),
                             g_idx[:, :1]).reshape(-1).astype(jnp.int32)

    cparams = dict(vmem_limit_bytes=vmem_limit)

    # ---- kernel 1: XB[b] = x @ bases[b] (bf16-stored, all bases per step) ----
    xb = pl.pallas_call(
        functools.partial(_basis_projection_kernel, num_bases=num_bases),
        out_shape=jax.ShapeDtypeStruct((num_bases, n_p, d_out_p), mxu_dtype),
        grid_spec=pltpu.PrefetchScalarGridSpec(
            num_scalar_prefetch=0,
            grid=(n_src_tiles, n_k_tiles),
            in_specs=[
                pl.BlockSpec((tns, tk), lambda s, k: (s, k)),                  # x tile
                pl.BlockSpec((num_bases, tk, d_out_p), lambda s, k: (0, k, 0)),  # bases slab
            ],
            out_specs=pl.BlockSpec((num_bases, tns, d_out_p), lambda s, k: (0, s, 0)),
            scratch_shapes=[pltpu.VMEM((num_bases, tns, d_out_p), f32)],
        ),
        compiler_params=pltpu.CompilerParams(
            dimension_semantics=("parallel", "arbitrary"), **cparams),
    )(x_p, bases_p)

    # ---- kernel 2: acc[t] += adj[r, t, s] @ (sum_b att[r, b] * XB[b, s]) ----
    def adj_index_map(t, s, r, mask_ref, fetch_ref):
        g = (t * n_src_tiles + s) * num_relations + r
        f = fetch_ref[g]                      # last nonempty block in this target tile
        fr = f % num_relations
        fts = f // num_relations
        fs = fts % n_src_tiles
        ft = fts // n_src_tiles
        return (fr, ft, fs)

    kernel = functools.partial(_relation_aggregation_kernel,
                               num_bases=num_bases,
                               num_relations=num_relations,
                               n_src_tiles=n_src_tiles)
    out_p = pl.pallas_call(
        kernel,
        out_shape=jax.ShapeDtypeStruct((n_p, d_out_p), mxu_dtype),
        grid_spec=pltpu.PrefetchScalarGridSpec(
            num_scalar_prefetch=2,
            # relation innermost: XB tile only changes with the source tile, and the
            # accumulator/output tile only changes with the (parallel) target tile.
            grid=(n_tgt_tiles, n_src_tiles, num_relations),
            in_specs=[
                pl.BlockSpec(memory_space=pltpu.MemorySpace.SMEM),       # att (R*B,)
                # TODO(synk): add pipeline_mode=pl.Buffered(3) on adj if profiling shows
                #             exposed DMA from the plane-hopping relation-innermost fetch.
                pl.BlockSpec((1, tnt, tns), adj_index_map),              # adj tile
                pl.BlockSpec((num_bases, tns, d_out_p),
                             lambda t, s, r, m, f: (0, s, 0)),           # XB tile (bf16)
            ],
            out_specs=pl.BlockSpec((tnt, d_out_p), lambda t, s, r, m, f: (t, 0)),
            scratch_shapes=[pltpu.VMEM((tnt, d_out_p), f32)],
        ),
        compiler_params=pltpu.CompilerParams(
            dimension_semantics=("parallel", "arbitrary", "arbitrary"), **cparams),
    )(mask_flat, fetch_flat, att_flat, adj, xb)

    out = out_p[:num_nodes, :output_dim].astype(f32)
    if accumulator is not None:
        out = out + accumulator.astype(f32)
    return out.astype(x.dtype)


# --------------------------------------------------------------------------------------
# Pure-JAX reference matching the PyTorch edge-wise semantics
# --------------------------------------------------------------------------------------
def _reference(x, source, target, edge_type, att, bases,
               edge_weights=None, accumulator=None):
    num_nodes = x.shape[0]
    output_dim = bases.shape[-1]
    acc = (jnp.zeros((num_nodes, output_dim), x.dtype) if accumulator is None
           else accumulator)
    w_full = jnp.einsum("rb,bio->rio", att, bases)          # (R, D_in, D_out)
    msg = jnp.einsum("ei,eio->eo", x[source], w_full[edge_type])
    if edge_weights is not None:
        msg = msg * edge_weights[:, None]
    return acc.at[target].add(msg)


if __name__ == "__main__":
    key = jax.random.PRNGKey(0)
    num_nodes, input_dim, output_dim = 16, 32, 32
    num_relations, num_bases, num_edges = 6, 2, 64

    ks = jax.random.split(key, 8)
    x = jax.random.normal(ks[0], (num_nodes, input_dim), jnp.float32)
    source = jax.random.randint(ks[1], (num_edges,), 0, num_nodes)
    target = jax.random.randint(ks[2], (num_edges,), 0, num_nodes)
    # edge types only cover relations 0..3 so relations 4,5 exercise the
    # sparsity-aware block-skip (empty (r, t, s) tiles).
    edge_type = jax.random.randint(ks[3], (num_edges,), 0, 4)
    edge_weights = jax.random.uniform(ks[4], (num_edges,), jnp.float32)

    # Deterministic "reset_parameters": basis-decomposition parameters.
    att = jax.random.normal(ks[5], (num_relations, num_bases), jnp.float32)
    bases = 0.1 * jax.random.normal(ks[6], (num_bases, input_dim, output_dim), jnp.float32)
    acc0 = jax.random.normal(ks[7], (num_nodes, output_dim), jnp.float32)

    # Default (bf16 MXU operands / bf16 XB) path.
    out_bf16 = bases_decomposition_forward(
        x, source, target, edge_type, att, bases, edge_weights=edge_weights)
    # Full f32 path, exercising the accumulator branch.
    out_f32 = bases_decomposition_forward(
        x, source, target, edge_type, att, bases, edge_weights=edge_weights,
        accumulator=acc0, mxu_dtype=jnp.float32)
    out_bf16, out_f32 = jax.block_until_ready((out_bf16, out_f32))

    ref = _reference(x, source, target, edge_type, att, bases, edge_weights=edge_weights)
    ref_acc = _reference(x, source, target, edge_type, att, bases,
                         edge_weights=edge_weights, accumulator=acc0)

    assert out_bf16.shape == (num_nodes, output_dim)
    assert jnp.allclose(out_f32, ref_acc, atol=1e-4, rtol=1e-4), "f32 path mismatch"
    assert jnp.allclose(out_bf16, ref, atol=1e-1, rtol=5e-2), "bf16 path mismatch"
    print("KERNEL_OK")
</pallas_src>

<mosaic_0001>
module attributes {stable_mosaic.version = 11 : i64} {
  func.func @_basis_projection_kernel(%arg0: i32, %arg1: i32, %arg2: memref<128x128xbf16, #tpu.memory_space<vmem>>, %arg3: memref<2x128x128xbf16, #tpu.memory_space<vmem>>, %arg4: memref<2x128x128xbf16, #tpu.memory_space<vmem>>, %arg5: memref<2x128x128xf32, #tpu.memory_space<vmem>>) attributes {dimension_semantics = [#tpu.dimension_semantics<parallel>, #tpu.dimension_semantics<arbitrary>], iteration_bounds = array<i64: 1, 1>, scalar_prefetch = 0 : i64, scratch_operands = 1 : i64, tpu.core_type = #tpu.core_type<tc>, window_params = [{transform_indices = @transform_0, window_bounds = array<i64: 128, 128>}, {transform_indices = @transform_1, window_bounds = array<i64: 2, 128, 128>}, {transform_indices = @transform_2, window_bounds = array<i64: 2, 128, 128>}]} {
    %c0_i32 = arith.constant 0 : i32
    %0 = arith.cmpi eq, %arg1, %c0_i32 : i32
    %1 = arith.extui %0 : i1 to i32
    %c0_i32_0 = arith.constant 0 : i32
    %2 = arith.cmpi ne, %1, %c0_i32_0 : i32
    scf.if %2 {
      %cst_22 = arith.constant 0.000000e+00 : f32
      %25 = vector.broadcast %cst_22 : f32 to vector<2x128x128xf32>
      %c0_23 = arith.constant 0 : index
      %c0_24 = arith.constant 0 : index
      %c0_25 = arith.constant 0 : index
      %26 = vector.load %arg5[%c0_23, %c0_24, %c0_25] : memref<2x128x128xf32, #tpu.memory_space<vmem>>, vector<2x128x128xf32>
      tpu.vector_store %arg5[%c0_23, %c0_24, %c0_25], %25 {strides = array<i32>} : memref<2x128x128xf32, #tpu.memory_space<vmem>>, vector<2x128x128xf32>,
    } else {
    }
    %c0 = arith.constant 0 : index
    %c0_1 = arith.constant 0 : index
    %3 = vector.load %arg2[%c0, %c0_1] : memref<128x128xbf16, #tpu.memory_space<vmem>>, vector<128x128xbf16>
    %c0_2 = arith.constant 0 : index
    %c0_3 = arith.constant 0 : index
    %c0_4 = arith.constant 0 : index
    %4 = vector.load %arg5[%c0_2, %c0_3, %c0_4] : memref<2x128x128xf32, #tpu.memory_space<vmem>>, vector<1x128x128xf32>
    %5 = vector.shape_cast %4 : vector<1x128x128xf32> to vector<128x128xf32>
    %c0_5 = arith.constant 0 : index
    %c0_6 = arith.constant 0 : index
    %c0_7 = arith.constant 0 : index
    %6 = vector.load %arg3[%c0_5, %c0_6, %c0_7] : memref<2x128x128xbf16, #tpu.memory_space<vmem>>, vector<1x128x128xbf16>
    %7 = vector.shape_cast %6 : vector<1x128x128xbf16> to vector<128x128xbf16>
    %cst = arith.constant dense<0.000000e+00> : vector<128x128xf32>
    %8 = tpu.matmul %3, %7, %cst {dimension_numbers = #tpu.dot_dimension_numbers<[1], [0], [0], [1], [0, 0, 1, 1], [], []>} : vector<128x128xbf16>, vector<128x128xbf16>, vector<128x128xf32> -> vector<128x128xf32>
    %9 = arith.addf %5, %8 : vector<128x128xf32>
    %c0_8 = arith.constant 0 : index
    %c0_9 = arith.constant 0 : index
    %c0_10 = arith.constant 0 : index
    %10 = vector.load %arg5[%c0_8, %c0_9, %c0_10] : memref<2x128x128xf32, #tpu.memory_space<vmem>>, vector<1x128x128xf32>
    %11 = vector.shape_cast %10 : vector<1x128x128xf32> to vector<128x128xf32>
    %12 = vector.shape_cast %9 : vector<128x128xf32> to vector<1x128x128xf32>
    tpu.vector_store %arg5[%c0_8, %c0_9, %c0_10], %12 {strides = array<i32>} : memref<2x128x128xf32, #tpu.memory_space<vmem>>, vector<1x128x128xf32>,
    %c1 = arith.constant 1 : index
    %c0_11 = arith.constant 0 : index
    %c0_12 = arith.constant 0 : index
    %13 = vector.load %arg5[%c1, %c0_11, %c0_12] : memref<2x128x128xf32, #tpu.memory_space<vmem>>, vector<1x128x128xf32>
    %14 = vector.shape_cast %13 : vector<1x128x128xf32> to vector<128x128xf32>
    %c1_13 = arith.constant 1 : index
    %c0_14 = arith.constant 0 : index
    %c0_15 = arith.constant 0 : index
    %15 = vector.load %arg3[%c1_13, %c0_14, %c0_15] : memref<2x128x128xbf16, #tpu.memory_space<vmem>>, vector<1x128x128xbf16>
    %16 = vector.shape_cast %15 : vector<1x128x128xbf16> to vector<128x128xbf16>
    %cst_16 = arith.constant dense<0.000000e+00> : vector<128x128xf32>
    %17 = tpu.matmul %3, %16, %cst_16 {dimension_numbers = #tpu.dot_dimension_numbers<[1], [0], [0], [1], [0, 0, 1, 1], [], []>} : vector<128x128xbf16>, vector<128x128xbf16>, vector<128x128xf32> -> vector<128x128xf32>
    %18 = arith.addf %14, %17 : vector<128x128xf32>
    %c1_17 = arith.constant 1 : index
    %c0_18 = arith.constant 0 : index
    %c0_19 = arith.constant 0 : index
    %19 = vector.load %arg5[%c1_17, %c0_18, %c0_19] : memref<2x128x128xf32, #tpu.memory_space<vmem>>, vector<1x128x128xf32>
    %20 = vector.shape_cast %19 : vector<1x128x128xf32> to vector<128x128xf32>
    %21 = vector.shape_cast %18 : vector<128x128xf32> to vector<1x128x128xf32>
    tpu.vector_store %arg5[%c1_17, %c0_18, %c0_19], %21 {strides = array<i32>} : memref<2x128x128xf32, #tpu.memory_space<vmem>>, vector<1x128x128xf32>,
    %c0_i32_20 = arith.constant 0 : i32
    %22 = arith.cmpi eq, %arg1, %c0_i32_20 : i32
    %23 = arith.extui %22 : i1 to i32
    %c0_i32_21 = arith.constant 0 : i32
    %24 = arith.cmpi ne, %23, %c0_i32_21 : i32
    scf.if %24 {
      %c0_22 = arith.constant 0 : index
      %c0_23 = arith.constant 0 : index
      %c0_24 = arith.constant 0 : index
      %25 = vector.load %arg5[%c0_22, %c0_23, %c0_24] : memref<2x128x128xf32, #tpu.memory_space<vmem>>, vector<2x128x128xf32>
      %26 = arith.truncf %25 : vector<2x128x128xf32> to vector<2x128x128xbf16>
      %c0_25 = arith.constant 0 : index
      %c0_26 = arith.constant 0 : index
      %c0_27 = arith.constant 0 : index
      %27 = vector.load %arg4[%c0_25, %c0_26, %c0_27] : memref<2x128x128xbf16, #tpu.memory_space<vmem>>, vector<2x128x128xbf16>
      tpu.vector_store %arg4[%c0_25, %c0_26, %c0_27], %26 {strides = array<i32>} : memref<2x128x128xbf16, #tpu.memory_space<vmem>>, vector<2x128x128xbf16>,
    } else {
    }
    return
  }
  func.func @transform_0(%arg0: i32, %arg1: i32) -> (i32, i32) {
    %c0_i32 = arith.constant 0 : i32
    return %arg0, %arg1 : i32, i32
  }
  func.func @transform_1(%arg0: i32, %arg1: i32) -> (i32, i32, i32) {
    %c0_i32 = arith.constant 0 : i32
    %c0_i32_0 = arith.constant 0 : i32
    %c0_i32_1 = arith.constant 0 : i32
    return %c0_i32, %arg1, %c0_i32_0 : i32, i32, i32
  }
  func.func @transform_2(%arg0: i32, %arg1: i32) -> (i32, i32, i32) {
    %c0_i32 = arith.constant 0 : i32
    %c0_i32_0 = arith.constant 0 : i32
    %c0_i32_1 = arith.constant 0 : i32
    return %c0_i32, %arg0, %c0_i32_0 : i32, i32, i32
  }
}

</mosaic_0001>

<bundles_post_ra>
// kernel: tpu_custom_call.1
= control target key start
LH: loop header
LB: loop body
LE: loop exit
PB: predicated region body
PF: predicated region fallthrough
CT: control target
= control target key end

     0   :  { %7 = vsyncpa [#allocation4], 0  ;;  %s1186_s0 = inlined_call_operand.hbm [shape: bf16[128,128], index: 0, kind: input, shape index: {}]   ;;  %s1187_s1 = inlined_call_operand.hbm [shape: bf16[2,128,128], index: 1, kind: input, shape index: {}]   ;;  %s1188_s2 = inlined_call_operand.hbm [shape: bf16[2,128,128], index: 2, kind: output, shape index: {}]  }
   0x1   :  { %8 = vsyncpa [#allocation7], 0 }
   0x2   :  { %9 = vsyncpa [#allocation5], 0  ;;  %s1148_s9 = smov [#allocation3]  }
   0x3   :  { %s15_s10 = sshll.u32 %s1148_s9, 4  ;;  %s16_s10 = int_to_ptr.vmem [resolvable:$true] %s15_s10 }
   0x4   :  { %s1090_s11 = scalar_lea.vmem %s16_s10, 1024  ;;  %p1095_p1 = scmp.lt.s32.totalorder %s16_s10, %s16_s10 }
   0x5   :  { %p1091_p0 = scmp.ne.s32.totalorder %s16_s10, %s1090_s11  ;;  %p1096_p2 = scmp.lt.s32.totalorder %s1090_s11, %s1090_s11 }
   0x7   :  { %p1097_p3 = por %p1096_p2, %p1095_p1 }
   0x9   :  { %p1098_p4 = pnand %p1097_p3, %p1091_p0 }
   0xb   :  { %1101 = shalt.err (!%p1098_p4)
}
   0xc   :  { %s1149_s12 = smov 64   ;;  %s1150_s13 = smov 4  }
   0xd   :  { %21 = dma.hbm_to_vmem [thread:$0]  %s1186_s0, 1024, %s16_s10, [#allocation4], %s1149_s12, %s1149_s12, %s1150_s13  }
   0xe   :  { %s1151_s16 = smov [#allocation6]  }
   0xf   :  { %s27_s17 = sshll.u32 %s1151_s16, 4  ;;  %s28_s17 = int_to_ptr.vmem [resolvable:$true] %s27_s17 }
  0x10   :  { %s1110_s18 = scalar_lea.vmem %s28_s17, 2048  ;;  %p1115_p6 = scmp.lt.s32.totalorder %s28_s17, %s28_s17 }
  0x11   :  { %p1111_p5 = scmp.ne.s32.totalorder %s28_s17, %s1110_s18  ;;  %p1116_p7 = scmp.lt.s32.totalorder %s1110_s18, %s1110_s18 }
  0x13   :  { %p1117_p8 = por %p1116_p7, %p1115_p6 }
  0x15   :  { %p1118_p9 = pnand %p1117_p8, %p1111_p5 }
  0x17   :  { %1121 = shalt.err (!%p1118_p9)
}
  0x18   :  { %33 = dma.hbm_to_vmem [thread:$0]  %s1187_s1, 2048, %s28_s17, [#allocation7], %s1149_s12, %s1149_s12, %s1150_s13  }
  0x19   :  { %1142 = dma.done.wait [#allocation4], 1024  }
  0x1a   :  { %1143 = vsyncadd [#allocation4], 4294966272 }
  0x1b   :  { %1144 = dma.done.wait [#allocation7], 2048  }
  0x1c   :  { %1145 = vsyncadd [#allocation7], 4294965248  ;;  %v1058_v0 = vld [vmem:[#allocation6 + $0x38] sm:$0xff]   ;;  %v1060_v2 = vld [vmem:[#allocation6 + $0x30] sm:$0xff]   ;;  %s1152_s0 = smov [#allocation8]  }
  0x1d   :  { %v1059_v1 = vld [vmem:[#allocation6 + $0x78] sm:$0xff]   ;;  %989 = vmatprep.subr.bf16.mxu0 %v1058_v0  ;;  %v1061_v3 = vld [vmem:[#allocation6 + $0x70] sm:$0xff]   ;;  %v1062_v4 = vld [vmem:[#allocation6 + $0x28] sm:$0xff]   ;;  %s761_s1 = sshll.u32 %s1152_s0, 4  ;;  %s762_s1 = int_to_ptr.vmem [resolvable:$true] %s761_s1 }
  0x1e   :  { %1021 = vmatprep.subr.bf16.mxu1 %v1059_v1  ;;  %990 = vmatpush3.bf16.msra.mxu0 %v1058_v0  ;;  %v1063_v5 = vld [vmem:[#allocation6 + $0x68] sm:$0xff]   ;;  %v1064_v6 = vld [vmem:[#allocation6 + $0x20] sm:$0xff]   ;;  %v1066_v8 = vld [vmem:[#allocation6 + $0x18] sm:$0xff]   ;;  %s1122_s21 = scalar_lea.vmem %s762_s1, 2048  ;;  %p1127_p11 = scmp.lt.s32.totalorder %s762_s1, %s762_s1 }
  0x1f   :  { %1022 = vmatpush3.bf16.msra.mxu1 %v1059_v1  ;;  %991 = vmatprep.subr.bf16.mxu0 %v1060_v2  ;;  %v1065_v7 = vld [vmem:[#allocation6 + $0x60] sm:$0xff]   ;;  %v1067_v9 = vld [vmem:[#allocation6 + $0x58] sm:$0xff]   ;;  %v1068_v10 = vld [vmem:[#allocation6 + $0x10] sm:$0xff]   ;;  %p1123_p10 = scmp.ne.s32.totalorder %s762_s1, %s1122_s21  ;;  %p1128_p12 = scmp.lt.s32.totalorder %s1122_s21, %s1122_s21 }
  0x20   :  { %1023 = vmatprep.subr.bf16.mxu1 %v1061_v3  ;;  %v1074_v11 = vld [vmem:[#allocation3] sm:$0xff]   ;;  %v1069_v12 = vld [vmem:[#allocation6 + $0x50] sm:$0xff]   ;;  %v1070_v13 = vld [vmem:[#allocation6 + $0x8] sm:$0xff]  }
  0x21   :  { %1005 = vmatprep.mubr.bf16.mxu0 %v1074_v11  ;;  %1037 = vmatprep.mubr.bf16.mxu1 %v1074_v11  ;;  %v1071_v14 = vld [vmem:[#allocation6 + $0x48] sm:$0xff]   ;;  %v1072_v15 = vld [vmem:[#allocation6] sm:$0xff]   ;;  %v1076_v18 = vld [vmem:[#allocation3 + $0x10] sm:$0xff]   ;;  %p1129_p13 = por %p1128_p12, %p1127_p11 }
  0x22   :  { %992 = vmatpush3.bf16.msra.mxu0 %v1060_v2  ;;  %v1073_v16 = vld [vmem:[#allocation6 + $0x40] sm:$0xff]   ;;  %v1075_v17 = vld [vmem:[#allocation3 + $0x8] sm:$0xff]   ;;  %v1077_v19 = vld [vmem:[#allocation3 + $0x18] sm:$0xff]  }
  0x23   :  { %1024 = vmatpush3.bf16.msra.mxu1 %v1061_v3  ;;  %993 = vmatprep.subr.bf16.mxu0 %v1062_v4  ;;  %v1078_v20 = vld [vmem:[#allocation3 + $0x20] sm:$0xff]   ;;  %v1079_v21 = vld [vmem:[#allocation3 + $0x28] sm:$0xff]   ;;  %v1080_v22 = vld [vmem:[#allocation3 + $0x30] sm:$0xff]   ;;  %p1130_p0 = pnand %p1129_p13, %p1123_p10 }
  0x24   :  { %1025 = vmatprep.subr.bf16.mxu1 %v1063_v5  ;;  %v1081_v23 = vld [vmem:[#allocation3 + $0x38] sm:$0xff]  }
  0x26   :  { %994 = vmatpush3.bf16.msra.mxu0 %v1062_v4 }
  0x27   :  { %1026 = vmatpush3.bf16.msra.mxu1 %v1063_v5  ;;  %995 = vmatprep.subr.bf16.mxu0 %v1064_v6 }
  0x28   :  { %1027 = vmatprep.subr.bf16.mxu1 %v1065_v7 }
  0x2a   :  { %996 = vmatpush3.bf16.msra.mxu0 %v1064_v6 }
  0x2b   :  { %1028 = vmatpush3.bf16.msra.mxu1 %v1065_v7  ;;  %997 = vmatprep.subr.bf16.mxu0 %v1066_v8 }
  0x2c   :  { %1029 = vmatprep.subr.bf16.mxu1 %v1067_v9 }
  0x2e   :  { %998 = vmatpush3.bf16.msra.mxu0 %v1066_v8 }
  0x2f   :  { %1030 = vmatpush3.bf16.msra.mxu1 %v1067_v9  ;;  %999 = vmatprep.subr.bf16.mxu0 %v1068_v10 }
  0x30   :  { %1031 = vmatprep.subr.bf16.mxu1 %v1069_v12 }
  0x32   :  { %1000 = vmatpush3.bf16.msra.mxu0 %v1068_v10 }
  0x33   :  { %1032 = vmatpush3.bf16.msra.mxu1 %v1069_v12  ;;  %1001 = vmatprep.subr.bf16.mxu0 %v1070_v13 }
  0x34   :  { %1033 = vmatprep.subr.bf16.mxu1 %v1071_v14 }
  0x36   :  { %1002 = vmatpush3.bf16.msra.mxu0 %v1070_v13 }
  0x37   :  { %1034 = vmatpush3.bf16.msra.mxu1 %v1071_v14  ;;  %1003 = vmatprep.subr.bf16.mxu0 %v1072_v15 }
  0x38   :  { %1035 = vmatprep.subr.bf16.mxu1 %v1073_v16 }
  0x3a   :  { %1004 = vmatpush3.bf16.msra.mxu0 %v1072_v15 }
  0x3b   :  { %1036 = vmatpush3.bf16.msra.mxu1 %v1073_v16 }
  0x3d   :  { %1006 = vmatmul.mubr.bf16.vlgmr.msra.gmra.mxu0 %v1075_v17 }
  0x3e   :  { %1038 = vmatmul.mubr.bf16.vlgmr.msra.gmra.mxu1 %v1075_v17  ;;  %1009 = vmatprep.mubr.bf16.mxu0 %v1076_v18 }
  0x3f   :  { %1041 = vmatprep.mubr.bf16.mxu1 %v1076_v18 }
  0x45   :  { %1010 = vmatmul.mubr.bf16.gmra.mxu0 %v1077_v19 }
  0x46   :  { %1042 = vmatmul.mubr.bf16.gmra.mxu1 %v1077_v19  ;;  %1013 = vmatprep.mubr.bf16.mxu0 %v1078_v20 }
  0x47   :  { %1045 = vmatprep.mubr.bf16.mxu1 %v1078_v20 }
  0x4d   :  { %1014 = vmatmul.mubr.bf16.gmra.mxu0 %v1079_v21 }
  0x4e   :  { %1046 = vmatmul.mubr.bf16.gmra.mxu1 %v1079_v21  ;;  %1017 = vmatprep.mubr.bf16.mxu0 %v1080_v22 }
  0x4f   :  { %1049 = vmatprep.mubr.bf16.mxu1 %v1080_v22 }
  0x55   :  { %1018 = vmatmul.mubr.bf16.gmra.mxu0 %v1081_v23 }
  0x56   :  { %1050 = vmatmul.mubr.bf16.gmra.mxu1 %v1081_v23 }
  0xfd   :  { %v1007_v24 = vpop.f32.mrf.mxu0 }
  0xfe   :  { %v1039_v25 = vpop.f32.mrf.mxu1 }
  0xff   :  { %v255_v26 = vpop.f32.mrf.mxu0 }
 0x100   :  { %v466_v27 = vpop.f32.mrf.mxu1 }
 0x101   :  { %v1008_v28 = vpop.f32.mrf.mxu0 }
 0x102   :  { %v870_v29 = vpack.c.bf16 %v1008_v28, %v1007_v24  ;;  %v1040_v30 = vpop.f32.mrf.mxu1 }
 0x103   :  { %v910_v31 = vpack.c.bf16 %v1040_v30, %v1039_v25  ;;  %v258_v32 = vpop.f32.mrf.mxu0 }
 0x104   :  { %942 = vst [vmem:[#allocation8 + $0x8] sm:$0xff] %v870_v29   ;;  %v865_v33 = vpack.c.bf16 %v258_v32, %v255_v26  ;;  %v469_v34 = vpop.f32.mrf.mxu1 }
 0x105   :  { %950 = vst [vmem:[#allocation8 + $0x48] sm:$0xff] %v910_v31   ;;  %v905_v35 = vpack.c.bf16 %v469_v34, %v466_v27  ;;  %v1011_v36 = vpop.f32.mrf.mxu0 }
 0x106   :  { %866 = vst [vmem:[#allocation8] sm:$0xff] %v865_v33   ;;  %v1043_v37 = vpop.f32.mrf.mxu1 }
 0x107   :  { %949 = vst [vmem:[#allocation8 + $0x40] sm:$0xff] %v905_v35   ;;  %v271_v38 = vpop.f32.mrf.mxu0 }
 0x108   :  { %v482_v39 = vpop.f32.mrf.mxu1 }
 0x109   :  { %v1012_v40 = vpop.f32.mrf.mxu0 }
 0x10a   :  { %v880_v41 = vpack.c.bf16 %v1012_v40, %v1011_v36  ;;  %v1044_v42 = vpop.f32.mrf.mxu1 }
 0x10b   :  { %v920_v43 = vpack.c.bf16 %v1044_v42, %v1043_v37  ;;  %v274_v44 = vpop.f32.mrf.mxu0 }
 0x10c   :  { %944 = vst [vmem:[#allocation8 + $0x18] sm:$0xff] %v880_v41   ;;  %v875_v45 = vpack.c.bf16 %v274_v44, %v271_v38  ;;  %v485_v46 = vpop.f32.mrf.mxu1 }
 0x10d   :  { %952 = vst [vmem:[#allocation8 + $0x58] sm:$0xff] %v920_v43   ;;  %v915_v47 = vpack.c.bf16 %v485_v46, %v482_v39  ;;  %v1015_v48 = vpop.f32.mrf.mxu0 }
 0x10e   :  { %943 = vst [vmem:[#allocation8 + $0x10] sm:$0xff] %v875_v45   ;;  %v1047_v49 = vpop.f32.mrf.mxu1 }
 0x10f   :  { %951 = vst [vmem:[#allocation8 + $0x50] sm:$0xff] %v915_v47   ;;  %v287_v50 = vpop.f32.mrf.mxu0 }
 0x110   :  { %v498_v51 = vpop.f32.mrf.mxu1 }
 0x111   :  { %v1016_v52 = vpop.f32.mrf.mxu0 }
 0x112   :  { %v890_v53 = vpack.c.bf16 %v1016_v52, %v1015_v48  ;;  %v1048_v54 = vpop.f32.mrf.mxu1 }
 0x113   :  { %v930_v55 = vpack.c.bf16 %v1048_v54, %v1047_v49  ;;  %v290_v56 = vpop.f32.mrf.mxu0 }
 0x114   :  { %946 = vst [vmem:[#allocation8 + $0x28] sm:$0xff] %v890_v53   ;;  %v885_v57 = vpack.c.bf16 %v290_v56, %v287_v50  ;;  %v501_v58 = vpop.f32.mrf.mxu1 }
 0x115   :  { %954 = vst [vmem:[#allocation8 + $0x68] sm:$0xff] %v930_v55   ;;  %v925_v59 = vpack.c.bf16 %v501_v58, %v498_v51  ;;  %v1019_v60 = vpop.f32.mrf.mxu0 }
 0x116   :  { %945 = vst [vmem:[#allocation8 + $0x20] sm:$0xff] %v885_v57   ;;  %v1051_v61 = vpop.f32.mrf.mxu1 }
 0x117   :  { %953 = vst [vmem:[#allocation8 + $0x60] sm:$0xff] %v925_v59   ;;  %v303_v62 = vpop.f32.mrf.mxu0 }
 0x118   :  { %v514_v63 = vpop.f32.mrf.mxu1 }
 0x119   :  { %v1020_v0 = vpop.f32.mrf.mxu0 }
 0x11a   :  { %v900_v1 = vpack.c.bf16 %v1020_v0, %v1019_v60  ;;  %v1052_v2 = vpop.f32.mrf.mxu1 }
 0x11b   :  { %v940_v3 = vpack.c.bf16 %v1052_v2, %v1051_v61  ;;  %v306_v4 = vpop.f32.mrf.mxu0 }
 0x11c   :  { %948 = vst [vmem:[#allocation8 + $0x38] sm:$0xff] %v900_v1   ;;  %v895_v5 = vpack.c.bf16 %v306_v4, %v303_v62  ;;  %v517_v6 = vpop.f32.mrf.mxu1 }
 0x11d   :  { %956 = vst [vmem:[#allocation8 + $0x78] sm:$0xff] %v940_v3   ;;  %v935_v7 = vpack.c.bf16 %v517_v6, %v514_v63 }
 0x11e   :  { %947 = vst [vmem:[#allocation8 + $0x30] sm:$0xff] %v895_v5  }
 0x11f   :  { %955 = vst [vmem:[#allocation8 + $0x70] sm:$0xff] %v935_v7  }
 0x120   :  { %1133 = shalt.err (!%p1130_p0)
}
 0x121   :  { %767 = dma.vmem_to_hbm [thread:$0]  %s762_s1, 2048, %s1188_s2, [#allocation5], %s1149_s12, %s1149_s12, %s1150_s13  }
 0x122   :  { %1146 = dma.done.wait [#allocation5], 2048  }
 0x123   :  { %1147 = vsyncadd [#allocation5], 4294965248 }
 0x124   :  { %771 = vsyncpa [#allocation4], 1 }
 0x125   :  { %772 = vsyncpa [#allocation7], 1 }
 0x126   :  { %773 = vsyncpa [#allocation5], 1 }

</bundles_post_ra>
